<compile_context>
chip_gen: v7x
topology: tpu7x:2x2x1
jax: 0.10.0
libtpu: 0.0.40
codegen_flags: <defaults>
</compile_context>

<pallas_src>
import functools

import jax
import jax.numpy as jnp
from jax.experimental import pallas as pl
from jax.experimental.pallas import tpu as pltpu


_LANE = 128              # lane width: intermediate feature dims padded to this
_SUBLANE = 16            # sublane multiple for batch tiles (covers bf16 packing and f32)
_SINGLE_TILE_ROWS = 256  # batches up to this run as one tile (grid of 1, no step overhead)


def _round_up(n, m):
    return ((n + m - 1) // m) * m


def _make_mlp_kernel(n_layers):
    """Fused MLP body: (Linear -> ReLU) * (n_layers - 1) -> Linear, all in one kernel."""

    def kernel(*refs):
        x_ref, out_ref = refs[0], refs[-1]
        # Cast the input tile to the MXU operand dtype in-kernel (VPU); x stays f32 and
        # unpadded in HBM so input DMA traffic is at its true width.
        h = x_ref[...].astype(refs[1].dtype)
        for l in range(n_layers):
            w_ref = refs[1 + 2 * l]
            b_ref = refs[2 + 2 * l]
            # MXU matmul with f32 accumulation; bias add happens in f32.
            acc = jnp.dot(h, w_ref[...], preferred_element_type=jnp.float32) + b_ref[...]
            if l < n_layers - 1:
                # ReLU on the f32 accumulator, downcast only for the next dot (v5e-friendly).
                h = jnp.maximum(acc, 0.0).astype(w_ref.dtype)
            else:
                h = acc
        out_ref[...] = h.astype(out_ref.dtype)

    return kernel


def prepare_params(params, compute_dtype=jnp.bfloat16):
    """One-time pad + cast of weights/biases, done OUTSIDE the hot forward path.

    Intermediate feature dims are zero-padded to multiples of 128 lanes (exact math:
    zero columns -> zero activations, ReLU(0)=0, zero rows contribute nothing).  The
    first layer keeps its true input dim (so x needs no HBM padding) and the last layer
    keeps its true output dim (so the kernel writes only the real action columns).
    """
    n = len(params)
    prepared = []
    in_dim = params[0][0].shape[0]
    for l, (w, b) in enumerate(params):
        fan_in, fan_out = w.shape
        out_dim = fan_out if l == n - 1 else _round_up(fan_out, _LANE)
        w_p = jnp.pad(
            w, ((0, in_dim - fan_in), (0, out_dim - fan_out))
        ).astype(compute_dtype)
        b_p = jnp.pad(b, (0, out_dim - fan_out)).reshape(1, -1).astype(jnp.float32)
        prepared.append((w_p, b_p))
        in_dim = out_dim
    return tuple(prepared)


@functools.partial(jax.jit, static_argnames=("max_block_b",))
def q_network_forward(x, prepared_params, *, max_block_b=1024):
    """x: (B, state_size) f32. prepared_params: output of prepare_params()."""
    B, S = x.shape
    n_layers = len(prepared_params)
    A = prepared_params[-1][0].shape[1]

    # Balanced batch tiling: a single tile for small batches; for large batches at least
    # two equal-sized tiles (so both v7x TensorCores / megacore shards get work) of at
    # most ~max_block_b rows, rounded to a sublane multiple.  Equal tiles avoid DMAing
    # up to a whole tile of zero rows.
    B_aligned = _round_up(B, _SUBLANE)
    if B_aligned > _SINGLE_TILE_ROWS:
        num_tiles = max(2, pl.cdiv(B_aligned, max_block_b))
    else:
        num_tiles = 1
    block_b = _round_up(pl.cdiv(B_aligned, num_tiles), _SUBLANE)
    B_pad = num_tiles * block_b

    x_p = x if B_pad == B else jnp.pad(x, ((0, B_pad - B), (0, 0)))

    inputs = [x_p]
    # x block: (block_b, S) -- S equals the full last dim, so it is a legal block size.
    in_specs = [pl.BlockSpec((block_b, S), lambda i: (i, 0))]
    for (w_p, b_p) in prepared_params:
        inputs += [w_p, b_p]
        in_specs += [
            pl.BlockSpec(w_p.shape, lambda i: (0, 0)),  # whole weight, constant block
            pl.BlockSpec(b_p.shape, lambda i: (0, 0)),  # whole bias, constant block
        ]

    out_p = pl.pallas_call(
        _make_mlp_kernel(n_layers),
        out_shape=jax.ShapeDtypeStruct((B_pad, A), jnp.float32),
        grid=(num_tiles,),
        in_specs=in_specs,
        out_specs=pl.BlockSpec((block_b, A), lambda i: (i, 0)),
        compiler_params=pltpu.CompilerParams(
            dimension_semantics=("parallel",),  # batch tiles independent (megacore/v7x TCs)
        ),
    )(*inputs)

    # Only strip batch padding (feature dim is already the true action width).
    return out_p if B_pad == B else out_p[:B]


def init_params(key, state_size, hidden_sizes, action_size):
    """Deterministic init mirroring torch.nn.Linear's U(-1/sqrt(fan_in), 1/sqrt(fan_in))."""
    sizes = [state_size] + list(hidden_sizes) + [action_size]
    params = []
    for fan_in, fan_out in zip(sizes[:-1], sizes[1:]):
        key, kw, kb = jax.random.split(key, 3)
        bound = 1.0 / jnp.sqrt(float(fan_in))
        w = jax.random.uniform(kw, (fan_in, fan_out), jnp.float32, -bound, bound)
        b = jax.random.uniform(kb, (fan_out,), jnp.float32, -bound, bound)
        params.append((w, b))
    return tuple(params)


def reference_forward(x, params, compute_dtype=jnp.float32):
    """Pure-JAX reference. With compute_dtype=bf16 it mirrors the kernel's operand casts."""
    cast = lambda a: a.astype(compute_dtype).astype(jnp.float32)
    h = cast(x)
    n = len(params)
    for l, (w, b) in enumerate(params):
        h = jnp.dot(h, cast(w), precision=jax.lax.Precision.HIGHEST) + b.reshape(1, -1)
        if l < n - 1:
            h = cast(jnp.maximum(h, 0.0))
    return h


if __name__ == "__main__":
    # Banana-navigation-like sizes, kept small: state=37, hidden=[64, 32], actions=4.
    state_size = 37
    hidden_sizes = [64, 32]
    action_size = 4
    batch = 16

    key = jax.random.PRNGKey(0)
    key, kx = jax.random.split(key)
    x = jax.random.normal(kx, (batch, state_size), jnp.float32)
    params = init_params(key, state_size, hidden_sizes, action_size)

    # Pad/cast weights once (outside the hot path) and reuse across calls.
    prepared = prepare_params(params)

    out = q_network_forward(x, prepared)
    out = jax.block_until_ready(out)
    assert out.shape == (batch, action_size)

    # Tight check vs. a reference that mirrors the kernel's bf16 operand quantization.
    ref_bf16 = reference_forward(x, params, compute_dtype=jnp.bfloat16)
    assert bool(jnp.allclose(out, ref_bf16, atol=1e-3, rtol=1e-3)), "mismatch vs bf16 reference"

    # Loose sanity check vs. full-f32 PyTorch-equivalent semantics.
    ref_f32 = reference_forward(x, params, compute_dtype=jnp.float32)
    assert bool(jnp.allclose(out, ref_f32, atol=1e-1, rtol=1e-1)), "mismatch vs f32 reference"

    print("KERNEL_OK")
</pallas_src>

<mosaic_0001>
module attributes {stable_mosaic.version = 11 : i64} {
  func.func @kernel(%arg0: i32, %arg1: memref<16x37xf32, #tpu.memory_space<vmem>>, %arg2: memref<37x128xbf16, #tpu.memory_space<vmem>>, %arg3: memref<1x128xf32, #tpu.memory_space<vmem>>, %arg4: memref<128x128xbf16, #tpu.memory_space<vmem>>, %arg5: memref<1x128xf32, #tpu.memory_space<vmem>>, %arg6: memref<128x4xbf16, #tpu.memory_space<vmem>>, %arg7: memref<1x4xf32, #tpu.memory_space<vmem>>, %arg8: memref<16x4xf32, #tpu.memory_space<vmem>>) attributes {dimension_semantics = [#tpu.dimension_semantics<parallel>], iteration_bounds = array<i64: 1>, scalar_prefetch = 0 : i64, scratch_operands = 0 : i64, tpu.core_type = #tpu.core_type<tc>, window_params = [{transform_indices = @transform_0, window_bounds = array<i64: 16, 37>}, {pipeline_mode = #tpu.pipeline_mode<synchronous>, transform_indices = @transform_1, window_bounds = array<i64: 37, 128>}, {pipeline_mode = #tpu.pipeline_mode<synchronous>, transform_indices = @transform_2, window_bounds = array<i64: 1, 128>}, {pipeline_mode = #tpu.pipeline_mode<synchronous>, transform_indices = @transform_3, window_bounds = array<i64: 128, 128>}, {pipeline_mode = #tpu.pipeline_mode<synchronous>, transform_indices = @transform_4, window_bounds = array<i64: 1, 128>}, {pipeline_mode = #tpu.pipeline_mode<synchronous>, transform_indices = @transform_5, window_bounds = array<i64: 128, 4>}, {pipeline_mode = #tpu.pipeline_mode<synchronous>, transform_indices = @transform_6, window_bounds = array<i64: 1, 4>}, {transform_indices = @transform_7, window_bounds = array<i64: 16, 4>}]} {
    %c0 = arith.constant 0 : index
    %c0_0 = arith.constant 0 : index
    %0 = vector.load %arg1[%c0, %c0_0] : memref<16x37xf32, #tpu.memory_space<vmem>>, vector<16x37xf32>
    %1 = arith.truncf %0 : vector<16x37xf32> to vector<16x37xbf16>
    %c0_1 = arith.constant 0 : index
    %c0_2 = arith.constant 0 : index
    %2 = vector.load %arg2[%c0_1, %c0_2] : memref<37x128xbf16, #tpu.memory_space<vmem>>, vector<37x128xbf16>
    %cst = arith.constant dense<0.000000e+00> : vector<16x128xf32>
    %3 = tpu.matmul %1, %2, %cst {dimension_numbers = #tpu.dot_dimension_numbers<[1], [0], [0], [1], [0, 0, 1, 1], [], []>} : vector<16x37xbf16>, vector<37x128xbf16>, vector<16x128xf32> -> vector<16x128xf32>
    %c0_3 = arith.constant 0 : index
    %c0_4 = arith.constant 0 : index
    %4 = vector.load %arg3[%c0_3, %c0_4] : memref<1x128xf32, #tpu.memory_space<vmem>>, vector<1x128xf32>
    %5 = vector.broadcast %4 : vector<1x128xf32> to vector<16x128xf32>
    %6 = arith.addf %3, %5 : vector<16x128xf32>
    %cst_5 = arith.constant 0.000000e+00 : f32
    %7 = vector.broadcast %cst_5 : f32 to vector<16x128xf32>
    %8 = arith.maximumf %6, %7 : vector<16x128xf32>
    %9 = arith.truncf %8 : vector<16x128xf32> to vector<16x128xbf16>
    %c0_6 = arith.constant 0 : index
    %c0_7 = arith.constant 0 : index
    %10 = vector.load %arg4[%c0_6, %c0_7] : memref<128x128xbf16, #tpu.memory_space<vmem>>, vector<128x128xbf16>
    %cst_8 = arith.constant dense<0.000000e+00> : vector<16x128xf32>
    %11 = tpu.matmul %9, %10, %cst_8 {dimension_numbers = #tpu.dot_dimension_numbers<[1], [0], [0], [1], [0, 0, 1, 1], [], []>} : vector<16x128xbf16>, vector<128x128xbf16>, vector<16x128xf32> -> vector<16x128xf32>
    %c0_9 = arith.constant 0 : index
    %c0_10 = arith.constant 0 : index
    %12 = vector.load %arg5[%c0_9, %c0_10] : memref<1x128xf32, #tpu.memory_space<vmem>>, vector<1x128xf32>
    %13 = vector.broadcast %12 : vector<1x128xf32> to vector<16x128xf32>
    %14 = arith.addf %11, %13 : vector<16x128xf32>
    %cst_11 = arith.constant 0.000000e+00 : f32
    %15 = vector.broadcast %cst_11 : f32 to vector<16x128xf32>
    %16 = arith.maximumf %14, %15 : vector<16x128xf32>
    %17 = arith.truncf %16 : vector<16x128xf32> to vector<16x128xbf16>
    %c0_12 = arith.constant 0 : index
    %c0_13 = arith.constant 0 : index
    %18 = vector.load %arg6[%c0_12, %c0_13] : memref<128x4xbf16, #tpu.memory_space<vmem>>, vector<128x4xbf16>
    %cst_14 = arith.constant dense<0.000000e+00> : vector<16x4xf32>
    %19 = tpu.matmul %17, %18, %cst_14 {dimension_numbers = #tpu.dot_dimension_numbers<[1], [0], [0], [1], [0, 0, 1, 1], [], []>} : vector<16x128xbf16>, vector<128x4xbf16>, vector<16x4xf32> -> vector<16x4xf32>
    %c0_15 = arith.constant 0 : index
    %c0_16 = arith.constant 0 : index
    %20 = vector.load %arg7[%c0_15, %c0_16] : memref<1x4xf32, #tpu.memory_space<vmem>>, vector<1x4xf32>
    %21 = vector.broadcast %20 : vector<1x4xf32> to vector<16x4xf32>
    %22 = arith.addf %19, %21 : vector<16x4xf32>
    %c0_17 = arith.constant 0 : index
    %c0_18 = arith.constant 0 : index
    %23 = vector.load %arg8[%c0_17, %c0_18] : memref<16x4xf32, #tpu.memory_space<vmem>>, vector<16x4xf32>
    tpu.vector_store %arg8[%c0_17, %c0_18], %22 {strides = array<i32>} : memref<16x4xf32, #tpu.memory_space<vmem>>, vector<16x4xf32>,
    return
  }
  func.func @transform_0(%arg0: i32) -> (i32, i32) {
    %c0_i32 = arith.constant 0 : i32
    %c0_i32_0 = arith.constant 0 : i32
    return %arg0, %c0_i32 : i32, i32
  }
  func.func @transform_1(%arg0: i32) -> (i32, i32) {
    %c0_i32 = arith.constant 0 : i32
    %c0_i32_0 = arith.constant 0 : i32
    %c0_i32_1 = arith.constant 0 : i32
    return %c0_i32, %c0_i32_0 : i32, i32
  }
  func.func @transform_2(%arg0: i32) -> (i32, i32) {
    %c0_i32 = arith.constant 0 : i32
    %c0_i32_0 = arith.constant 0 : i32
    %c0_i32_1 = arith.constant 0 : i32
    return %c0_i32, %c0_i32_0 : i32, i32
  }
  func.func @transform_3(%arg0: i32) -> (i32, i32) {
    %c0_i32 = arith.constant 0 : i32
    %c0_i32_0 = arith.constant 0 : i32
    %c0_i32_1 = arith.constant 0 : i32
    return %c0_i32, %c0_i32_0 : i32, i32
  }
  func.func @transform_4(%arg0: i32) -> (i32, i32) {
    %c0_i32 = arith.constant 0 : i32
    %c0_i32_0 = arith.constant 0 : i32
    %c0_i32_1 = arith.constant 0 : i32
    return %c0_i32, %c0_i32_0 : i32, i32
  }
  func.func @transform_5(%arg0: i32) -> (i32, i32) {
    %c0_i32 = arith.constant 0 : i32
    %c0_i32_0 = arith.constant 0 : i32
    %c0_i32_1 = arith.constant 0 : i32
    return %c0_i32, %c0_i32_0 : i32, i32
  }
  func.func @transform_6(%arg0: i32) -> (i32, i32) {
    %c0_i32 = arith.constant 0 : i32
    %c0_i32_0 = arith.constant 0 : i32
    %c0_i32_1 = arith.constant 0 : i32
    return %c0_i32, %c0_i32_0 : i32, i32
  }
  func.func @transform_7(%arg0: i32) -> (i32, i32) {
    %c0_i32 = arith.constant 0 : i32
    %c0_i32_0 = arith.constant 0 : i32
    return %arg0, %c0_i32 : i32, i32
  }
}

</mosaic_0001>

<bundles_post_ra>
// kernel: q_network_forward.1
= control target key start
LH: loop header
LB: loop body
LE: loop exit
PB: predicated region body
PF: predicated region fallthrough
CT: control target
= control target key end

     0   :  { %12 = vsyncpa [#allocation3], 0  ;;  %s708_s0 = inlined_call_operand.hbm [shape: f32[16,37], index: 0, kind: input, shape index: {}]   ;;  %s709_s1 = inlined_call_operand.hbm [shape: bf16[37,128], index: 1, kind: input, shape index: {}]   ;;  %s710_s2 = inlined_call_operand.vmem [shape: f32[1,128], index: 2, kind: input, shape index: {}]   ;;  %s711_s3 = inlined_call_operand.vmem [shape: bf16[128,128], index: 3, kind: input, shape index: {}]   ;;  %s712_s4 = inlined_call_operand.vmem [shape: f32[1,128], index: 4, kind: input, shape index: {}]   ;;  %s713_s5 = inlined_call_operand.vmem [shape: bf16[128,4], index: 5, kind: input, shape index: {}]   ;;  %s714_s6 = inlined_call_operand.vmem [shape: f32[1,4], index: 6, kind: input, shape index: {}]   ;;  %s715_s7 = inlined_call_operand.vmem [shape: f32[16,4], index: 7, kind: output, shape index: {}]  }
   0x1   :  { %13 = vsyncpa [#allocation5], 0  ;;  %s547_s24 = smov [#allocation2]   ;;  %s499_s28 = scalar_lea.hbm %s708_s0, 256 }
   0x2   :  { %s19_s25 = sshll.u32 %s547_s24, 4  ;;  %p500_p0 = scmp.ne.s32.totalorder %s708_s0, %s499_s28  ;;  %s20_s25 = int_to_ptr.vmem [resolvable:$true] %s19_s25 }
   0x3   :  { %p503_p1 = scmp.lt.u32.totalorder %s499_s28, %s708_s0 }
   0x5   :  { %p505_p2 = pnand %p503_p1, %p500_p0 }
   0x7   :  { %508 = shalt.err (!%p505_p2)
}
   0x8   :  { %s509_s10 = scalar_lea.vmem %s20_s25, 256  ;;  %p514_p4 = scmp.lt.s32.totalorder %s20_s25, %s20_s25 }
   0x9   :  { %p510_p3 = scmp.ne.s32.totalorder %s20_s25, %s509_s10  ;;  %p515_p5 = scmp.lt.s32.totalorder %s509_s10, %s509_s10 }
   0xb   :  { %p516_p6 = por %p515_p5, %p514_p4 }
   0xd   :  { %p517_p7 = pnand %p516_p6, %p510_p3 }
   0xf   :  { %520 = shalt.err (!%p517_p7)
}
  0x10   :  { %s548_s11 = smov 128   ;;  %s549_s12 = smov 8  }
  0x11   :  { %25 = dma.hbm_to_vmem [thread:$0]  %s708_s0, 256, %s20_s25, [#allocation3], %s548_s11, %s548_s11, %s549_s12  }
  0x12   :  { %s550_s15 = smov [#allocation4]   ;;  %s521_s19 = scalar_lea.hbm %s709_s1, 320 }
  0x13   :  { %s31_s16 = sshll.u32 %s550_s15, 4  ;;  %p522_p8 = scmp.ne.s32.totalorder %s709_s1, %s521_s19  ;;  %s32_s16 = int_to_ptr.vmem [resolvable:$true] %s31_s16 }
  0x14   :  { %p525_p9 = scmp.lt.u32.totalorder %s521_s19, %s709_s1 }
  0x16   :  { %p527_p10 = pnand %p525_p9, %p522_p8 }
  0x18   :  { %530 = shalt.err (!%p527_p10)
}
  0x19   :  { %s531_s24 = scalar_lea.vmem %s32_s16, 320  ;;  %p536_p12 = scmp.lt.s32.totalorder %s32_s16, %s32_s16 }
  0x1a   :  { %p532_p11 = scmp.ne.s32.totalorder %s32_s16, %s531_s24  ;;  %p537_p13 = scmp.lt.s32.totalorder %s531_s24, %s531_s24 }
  0x1c   :  { %p538_p0 = por %p537_p13, %p536_p12 }
  0x1e   :  { %p539_p1 = pnand %p538_p0, %p532_p11 }
  0x20   :  { %542 = shalt.err (!%p539_p1)
}
  0x21   :  { %s551_s0 = smov 64   ;;  %s552_s25 = smov 4  }
  0x22   :  { %37 = dma.hbm_to_vmem [thread:$0]  %s709_s1, 320, %s32_s16, [#allocation5], %s551_s0, %s551_s0, %s552_s25  }
  0x23   :  { %543 = dma.done.wait [#allocation3], 256  }
  0x24   :  { %544 = vsyncadd [#allocation3], 4294967040 }
  0x25   :  { %545 = dma.done.wait [#allocation5], 320  }
  0x26   :  { %546 = vsyncadd [#allocation5], 4294966976  ;;  %v553_v0 = vmov 0.0   ;;  %vm554_vm0 = vmmov 0   ;;  %vm89_vm1 = vcmask 1041408   ;;  %vm90_vm2 = vcmask 1042432  }
  0x27   :  { %421 = vmatprep.subr.bf16.mxu0 %v553_v0  ;;  %431 = vmatprep.subr.bf16.mxu1 %v553_v0  ;;  %v480_v1 = vld [vmem:[#allocation4] sm:$0xff]   ;;  %v555_v2 = vmov 65535   ;;  %v481_v4 = vld [vmem:[#allocation4 + $0x8] sm:$0xff]   ;;  %v482_v5 = vld [vmem:[#allocation4 + $0x10] ss:$0 sps:$4 sm:$0x77]  }
  0x28   :  { %427 = vmatprep.mubr.msk.bf16.mxu0 %vm554_vm0, %v553_v0  ;;  %447 = vmatprep.mubr.msk.bf16.mxu1 %vm554_vm0, %v553_v0  ;;  %v91_v3 = vsel %vm89_vm1, 4294967295, %v555_v2  ;;  %v55_v7 = vld [vmem:[#allocation2] sm:$0xff]  ;;  %v56_v9 = vld [vmem:[#allocation2 + $0x8] sm:$0xff]  ;;  %vm85_vm3 = vcmask 302080   ;;  %v485_v13 = vld [vmem:[%s711_s3 + $0x10] sm:$0xff]   ;;  %vm367_vm4 = vcmask 31744  }
  0x29   :  { %422 = vmatpush3.bf16.msra.mxu0 %v480_v1  ;;  %v92_v6 = vsel %vm90_vm2, %v91_v3, 0  ;;  %v483_v8 = vld [vmem:[%s711_s3] sm:$0xff]   ;;  %v484_v11 = vld [vmem:[%s711_s3 + $0x8] sm:$0xff]   ;;  %v57_v12 = vpack.c.bf16 %v56_v9, %v55_v7  ;;  %v486_v14 = vld [vmem:[%s711_s3 + $0x18] sm:$0xff]  }
  0x2a   :  { %423 = vmatprep.subr.bf16.mxu0 %v553_v0  ;;  %v94_v10 = vand.u32 %v482_v5, %v92_v6  ;;  %432 = vmatpush3.bf16.msra.mxu1 %v483_v8  ;;  %v487_v15 = vld [vmem:[%s711_s3 + $0x20] sm:$0xff]   ;;  %v488_v16 = vld [vmem:[%s711_s3 + $0x28] sm:$0xff]   ;;  %v489_v17 = vld [vmem:[%s711_s3 + $0x30] sm:$0xff]  }
  0x2b   :  { %433 = vmatprep.subr.bf16.mxu1 %v553_v0  ;;  %v490_v18 = vld [vmem:[%s711_s3 + $0x38] sm:$0xff]   ;;  %v491_v19 = vld [vmem:[%s713_s5] sm:$0xff]   ;;  %v492_v20 = vld [vmem:[%s713_s5 + $0x8] sm:$0xff]  }
  0x2c   :  { %v493_v21 = vld [vmem:[%s713_s5 + $0x10] sm:$0xff]   ;;  %v494_v22 = vld [vmem:[%s713_s5 + $0x18] sm:$0xff]   ;;  %v495_v23 = vld [vmem:[%s713_s5 + $0x20] sm:$0xff]  }
  0x2d   :  { %424 = vmatpush3.bf16.msra.mxu0 %v481_v4  ;;  %v496_v24 = vld [vmem:[%s713_s5 + $0x28] sm:$0xff]   ;;  %v376_v25 = vld [vmem:[%s710_s2] ss:$0 sm:$0xff]  ;;  %v497_v35 = vld [vmem:[%s713_s5 + $0x30] sm:$0xff]  }
  0x2e   :  { %425 = vmatprep.subr.bf16.mxu0 %v553_v0  ;;  %434 = vmatpush3.bf16.msra.mxu1 %v484_v11  ;;  %v498_v36 = vld [vmem:[%s713_s5 + $0x38] sm:$0xff]   ;;  %v381_v37 = vld [vmem:[%s712_s4] ss:$0 sm:$0xff] }
  0x2f   :  { %435 = vmatprep.subr.bf16.mxu1 %v553_v0  ;;  %v390_v47 = vld [vmem:[%s714_s6] ss:$0 sm:$0xff] }
  0x31   :  { %426 = vmatpush3.bf16.msra.mxu0 %v94_v10 }
  0x32   :  { %451 = vmatprep.subr.bf16.mxu0 %v553_v0  ;;  %436 = vmatpush3.bf16.msra.mxu1 %v485_v13 }
  0x33   :  { %437 = vmatprep.subr.bf16.mxu1 %v553_v0 }
  0x34   :  { %428 = vmatmul.mubr.msk.bf16.vlgmr.msra.gmra.mrb[0].mxu0 %vm85_vm3, %v57_v12 }
  0x35   :  { %467 = vmatprep.mubr.msk.bf16.mxu0 %vm554_vm0, %v553_v0  ;;  %452 = vmatpush3.bf16.msra.mxu0 %v491_v19 }
  0x36   :  { %438 = vmatpush3.bf16.msra.mxu1 %v486_v14  ;;  %453 = vmatprep.subr.bf16.mxu0 %v553_v0 }
  0x37   :  { %439 = vmatprep.subr.bf16.mxu1 %v553_v0 }
  0x39   :  { %454 = vmatpush3.bf16.msra.mxu0 %v492_v20 }
  0x3a   :  { %440 = vmatpush3.bf16.msra.mxu1 %v487_v15  ;;  %455 = vmatprep.subr.bf16.mxu0 %v553_v0 }
  0x3b   :  { %441 = vmatprep.subr.bf16.mxu1 %v553_v0 }
  0x3d   :  { %456 = vmatpush3.bf16.msra.mxu0 %v493_v21 }
  0x3e   :  { %442 = vmatpush3.bf16.msra.mxu1 %v488_v16  ;;  %457 = vmatprep.subr.bf16.mxu0 %v553_v0 }
  0x3f   :  { %443 = vmatprep.subr.bf16.mxu1 %v553_v0 }
  0x41   :  { %458 = vmatpush3.bf16.msra.mxu0 %v494_v22 }
  0x42   :  { %444 = vmatpush3.bf16.msra.mxu1 %v489_v17  ;;  %459 = vmatprep.subr.bf16.mxu0 %v553_v0 }
  0x43   :  { %445 = vmatprep.subr.bf16.mxu1 %v553_v0 }
  0x45   :  { %460 = vmatpush3.bf16.msra.mxu0 %v495_v23 }
  0x46   :  { %446 = vmatpush3.bf16.msra.mxu1 %v490_v18  ;;  %461 = vmatprep.subr.bf16.mxu0 %v553_v0 }
  0x49   :  { %462 = vmatpush3.bf16.msra.mxu0 %v496_v24 }
  0x4a   :  { %463 = vmatprep.subr.bf16.mxu0 %v553_v0 }
  0x4d   :  { %464 = vmatpush3.bf16.msra.mxu0 %v497_v35 }
  0x4e   :  { %465 = vmatprep.subr.bf16.mxu0 %v553_v0 }
  0x51   :  { %466 = vmatpush3.bf16.msra.mxu0 %v498_v36 }
 0x107   :  { %v130_v26 = vpop.f32.mrb[0].mxu0 }
 0x108   :  { %v131_v27 = vadd.f32 %v376_v25, %v130_v26  ;;  %v429_v28 = vpop.f32.mrb[1].mxu0 }
 0x109   :  { %v133_v29 = vpop.f32.mrb[2].mxu0 }
 0x10a   :  { %v134_v30 = vadd.f32 %v376_v25, %v133_v29  ;;  %v430_v31 = vpop.f32.mrb[3].mxu0  ;;  %v137_v32 = vmax.f32 %v131_v27, 0.0 }
 0x10c   :  { %v138_v33 = vmax.f32 %v134_v30, 0.0 }
 0x10e   :  { %v139_v34 = vpack.c.bf16 %v138_v33, %v137_v32 }
 0x110   :  { %448 = vmatmul.mubr.bf16.vlgmr.msra.gmra.mrb[0].mxu1 %v139_v34 }
 0x1e3   :  { %v245_v38 = vpop.f32.mrb[0].mxu1 }
 0x1e4   :  { %v246_v39 = vadd.f32 %v381_v37, %v245_v38  ;;  %v449_v40 = vpop.f32.mrb[1].mxu1 }
 0x1e5   :  { %v248_v41 = vpop.f32.mrb[2].mxu1 }
 0x1e6   :  { %v249_v42 = vadd.f32 %v381_v37, %v248_v41  ;;  %v450_v43 = vpop.f32.mrb[3].mxu1  ;;  %v252_v44 = vmax.f32 %v246_v39, 0.0 }
 0x1e8   :  { %v253_v45 = vmax.f32 %v249_v42, 0.0 }
 0x1ea   :  { %v254_v46 = vpack.c.bf16 %v253_v45, %v252_v44 }
 0x1ec   :  { %468 = vmatmul.mubr.bf16.vlgmr.msra.gmra.mrb[4].mxu0 %v254_v46 }
 0x2bf   :  { %v360_v48 = vpop.f32.mrb[4].mxu0 }
 0x2c0   :  { %v361_v49 = vadd.f32 %v390_v47, %v360_v48  ;;  %v469_v50 = vpop.f32.mrb[5].mxu0 }
 0x2c1   :  { %v363_v51 = vpop.f32.mrb[6].mxu0 }
 0x2c2   :  { %368 = vst.msk [vmem:[%s715_s7] sm:$0xff] %vm367_vm4, %v361_v49  ;;  %v364_v52 = vadd.f32 %v390_v47, %v363_v51  ;;  %v470_v53 = vpop.f32.mrb[7].mxu0 }
 0x2c4   :  { %369 = vst.msk [vmem:[%s715_s7 + $0x8] sm:$0xff] %vm367_vm4, %v364_v52 }
 0x2c5   :  { %374 = vsyncpa [#allocation3], 1 }
 0x2c6   :  { %375 = vsyncpa [#allocation5], 1 }

</bundles_post_ra>
